<compile_context>
chip_gen: v6e
topology: v6e:2x2x1
jax: 0.10.0
libtpu: 0.0.40
codegen_flags: <defaults>
</compile_context>

<pallas_src>
import numpy as np
import jax
import jax.numpy as jnp
from jax.experimental import pallas as pl
from jax.experimental.pallas import tpu as pltpu


# ---------------------------------------------------------------------------
# Fused Pallas kernel
# ---------------------------------------------------------------------------
def _sigmoid(x):
    # exp -> EUP slot; approximate reciprocal -> EUP vrcp (keeps VALU free)
    return pl.reciprocal(1.0 + jnp.exp(-x), approx=True)


def make_fused_kernel(layer_dims):
    """Fused forward: L x (merged NVGF matmul -> sigmoid -> local max pool)
    followed by the readout MLP, for a whole batch block per grid step.

    layer_dims: tuple of (F_out, N_in, N_out) per layer (static).

    Ref layout (inputs, in order):
      x_ref : (TB, F0*N0)              flat feature-major input signal
      per layer l (3 refs):
        W_ref    : (F_l*N_l, F_{l+1}*N_l)   merged shift-powers x taps matrix
        brow_ref : (1, F_{l+1}*N_l)         bias broadcast over nodes
        lm_ref   : (N_{l+1}, N_l)           additive log-mask (0 / -1e30) of
                                            the alpha-hop neighborhoods
      MLP refs : w1_ref (F_L*N_L, H), b1_ref (1, H), w2_ref (H, D), b2_ref (1, D)
    Output:
      o_ref : (TB, D)
    """
    L = len(layer_dims)

    def kernel(x_ref, *refs):
        o_ref = refs[-1]
        layer_refs = refs[:3 * L]
        w1_ref, b1_ref, w2_ref, b2_ref = refs[3 * L:3 * L + 4]

        cur = x_ref[...]                                     # (TB, F_l*N_l)
        for l, (f_out, n_in, n_out) in enumerate(layer_dims):
            w_ref, brow_ref, lm_ref = layer_refs[3 * l:3 * l + 3]
            # whole NVGF layer = one MXU matmul (+ bias) for the whole batch
            y = jnp.dot(cur, w_ref[...],
                        preferred_element_type=jnp.float32) + brow_ref[...]
            u = _sigmoid(y)                                  # (TB, F_out*N_in)
            # local max pooling over alpha-hop neighborhoods, per output
            # feature via static lane slices (no lane-dim reshapes)
            lm = lm_ref[...]                                 # (N_out, N_in)
            pooled = []
            for g in range(f_out):
                ug = u[:, g * n_in:(g + 1) * n_in]           # (TB, N_in)
                m = jnp.max(ug[:, None, :] + lm[None, :, :], axis=-1)
                pooled.append(m)                             # (TB, N_out)
            cur = jnp.concatenate(pooled, axis=-1)           # (TB, F_out*N_out)

        # readout MLP on the flat feature-major layout (== torch flatten)
        h = _sigmoid(jnp.dot(cur, w1_ref[...],
                             preferred_element_type=jnp.float32) + b1_ref[...])
        o_ref[...] = jnp.dot(h, w2_ref[...],
                             preferred_element_type=jnp.float32) + b2_ref[...]

    return kernel


# ---------------------------------------------------------------------------
# pallas_call wrapper
# ---------------------------------------------------------------------------
def _zeros_index_map(ndim):
    def im(i):
        return (0,) * ndim
    return im


def node_variant_gnn_forward(x, params, num_batch_blocks=1):
    """x: (B, F0, N0).  num_batch_blocks=1 -> one grid step (best on v5e/v6e);
    pass 2 on v7x to split the batch across the two TensorCores."""
    B, F0, N0 = x.shape
    layers = params["layers"]
    dim_out = params["b2"].shape[-1]

    assert B % num_batch_blocks == 0
    TB = B // num_batch_blocks

    # feature-major flatten (matches torch reshape(B, F*N) and the W_l layout)
    x_flat = x.reshape(B, F0 * N0)

    layer_dims = tuple((int(l["Fout"]), int(l["Nin"]), int(l["Nout"]))
                       for l in layers)

    flat_inputs = [x_flat]
    in_specs = [pl.BlockSpec((TB, F0 * N0), lambda i: (i, 0))]

    def add_const(arr):
        flat_inputs.append(arr)
        in_specs.append(pl.BlockSpec(arr.shape, _zeros_index_map(arr.ndim)))

    for layer in layers:
        for name in ("W", "brow", "lm"):
            add_const(layer[name])
    for name in ("W1", "b1", "W2", "b2"):
        add_const(params[name])

    out = pl.pallas_call(
        make_fused_kernel(layer_dims),
        out_shape=jax.ShapeDtypeStruct((B, dim_out), jnp.float32),
        grid=(num_batch_blocks,),
        in_specs=in_specs,
        out_specs=pl.BlockSpec((TB, dim_out), lambda i: (i, 0)),
        compiler_params=pltpu.CompilerParams(
            dimension_semantics=("parallel",),   # v7x: 2 TCs split the batch
            vmem_limit_bytes=32 * 1024 * 1024),  # re-budget per gen at large N
    )(*flat_inputs)
    return out


# ---------------------------------------------------------------------------
# Host-side setup (GSO, neighborhoods, merged-layer parameter layouts)
# ---------------------------------------------------------------------------
def make_gso(key, N, p=0.4):
    """Deterministic symmetric adjacency, degree-ordered, eigenvalue-normalized."""
    A = np.array(jax.random.uniform(key, (N, N)) < p, dtype=np.float64)
    A = np.triu(A, 1)
    A = A + A.T
    for i in range(N):  # avoid isolated nodes
        if A[i].sum() == 0:
            A[i, (i + 1) % N] = 1.0
            A[(i + 1) % N, i] = 1.0
    deg = A.sum(axis=1)
    order = np.argsort(-deg, kind="stable")   # "order specified by the GSO"
    A = A[order][:, order]
    A = A / np.max(np.abs(np.linalg.eigvalsh(A)))
    return A.astype(np.float32)


def compute_neighborhood_mask(S_np, n_hops, n_out, n_in):
    """alpha-hop reachability (incl. self) of the first n_out nodes, neighbors
    restricted to the first n_in nodes -- matches graphTools.computeNeighborhood
    + MaxPoolLocal gather/max semantics."""
    N = S_np.shape[0]
    A = (np.abs(S_np) > 1e-9).astype(np.float64)
    reach = np.eye(N)
    cur = np.eye(N)
    for _ in range(n_hops):
        cur = (cur @ A > 0).astype(np.float64)
        reach = np.maximum(reach, cur)
    return (reach[:n_out, :n_in] > 0).astype(np.float32)


def build_layer_params(h_np, b_np, S_np, Nin, Nout, alpha):
    """Fold shift powers, node-variant taps, the zero-padding of the signal and
    the output node slice of NodeVariantGF into ONE (Fin*Nin, Fout*Nin) matrix.

    h_np : (K, Fout, Fin, N0) node-variant taps (M == N -> one tap per node)
    b_np : (Fout, 1) bias
    """
    K, Fout, Fin, N0 = h_np.shape
    Spow = np.stack([np.linalg.matrix_power(S_np.astype(np.float64), k)
                     for k in range(K)])                       # (K, N0, N0)
    # W_full[f, m, g, n] = sum_k h[k,g,f,n] * S^k[n, m]
    W_full = np.einsum('kgfn,knm->fmgn', h_np.astype(np.float64), Spow)
    # input zero-padding -> keep only live input nodes m < Nin;
    # NodeVariantGF's index_select back to Nin -> keep output nodes n < Nin
    W = W_full[:, :Nin, :, :Nin].reshape(Fin * Nin, Fout * Nin)
    brow = np.repeat(b_np.reshape(Fout), Nin)[None, :]         # (1, Fout*Nin)

    mask = compute_neighborhood_mask(S_np, alpha, Nout, Nin)   # (Nout, Nin)
    assert bool(mask.any(axis=1).all()), "empty pooling neighborhood row"
    logmask = np.where(mask > 0.5, 0.0, -1e30)

    return dict(W=jnp.asarray(W, jnp.float32),
                brow=jnp.asarray(brow, jnp.float32),
                lm=jnp.asarray(logmask, jnp.float32),
                Fout=Fout, Nin=Nin, Nout=Nout)


if __name__ == "__main__":
    key = jax.random.PRNGKey(0)
    kgso, kx, *kw = jax.random.split(key, 12)

    # Architecture hyper-parameters (small, consistent with the module)
    B = 2
    dimNodeSignals = [4, 8, 8]       # F
    nShiftTaps = [3, 3]              # K
    nNodeTaps = [16, 16]             # M (== N -> identity tap assignment)
    nSelectedNodes = [12, 8]
    poolingSize = [2, 2]             # alpha (hops)
    dimLayersMLP = [16, 4]
    N0 = 16

    S_np = make_gso(kgso, N0)
    Ns = [N0] + nSelectedNodes
    L = len(nShiftTaps)

    layers = []
    for l in range(L):
        kh, kb = kw[2 * l], kw[2 * l + 1]
        K = nShiftTaps[l]
        Fin, Fout = dimNodeSignals[l], dimNodeSignals[l + 1]

        # NVGF taps, one tap per node (M == N); native layout (K, Fout, Fin, N)
        # TODO(synk): for M < N the taps of non-selected nodes are copied from
        # the nearest selected node (graphML.NodeVariantGF.addGSO); M == N here.
        h = 0.3 * jax.random.normal(kh, (K, Fout, Fin, N0), jnp.float32)
        b = 0.1 * jax.random.normal(kb, (Fout, 1), jnp.float32)

        layers.append(build_layer_params(np.asarray(h), np.asarray(b), S_np,
                                         Ns[l], Ns[l + 1], poolingSize[l]))

    # Readout MLP: Linear -> sigmoid -> Linear (weights stored input-major);
    # the flat (B, F*N) activation layout already matches the torch flatten.
    dimInputMLP = Ns[-1] * dimNodeSignals[-1]
    H, Dout = dimLayersMLP
    k1, k2, k3, k4 = kw[4], kw[5], kw[6], kw[7]
    W1 = 0.3 * jax.random.normal(k1, (dimInputMLP, H), jnp.float32)
    b1 = 0.1 * jax.random.normal(k2, (1, H), jnp.float32)
    W2 = 0.3 * jax.random.normal(k3, (H, Dout), jnp.float32)
    b2 = 0.1 * jax.random.normal(k4, (1, Dout), jnp.float32)

    params = dict(layers=layers, W1=W1, b1=b1, W2=W2, b2=b2)

    # Input: batchSize x dimFeatures x numberNodes
    x = jax.random.normal(kx, (B, dimNodeSignals[0], N0), jnp.float32)

    out = jax.block_until_ready(node_variant_gnn_forward(x, params))
    assert out.shape == (B, dimLayersMLP[-1])
    assert np.all(np.isfinite(np.array(out)))
    print("KERNEL_OK")
</pallas_src>

<mosaic_0001>
module attributes {stable_mosaic.version = 11 : i64} {
  func.func @kernel(%arg0: i32, %arg1: memref<2x64xf32, #tpu.memory_space<vmem>>, %arg2: memref<64x128xf32, #tpu.memory_space<vmem>>, %arg3: memref<1x128xf32, #tpu.memory_space<vmem>>, %arg4: memref<12x16xf32, #tpu.memory_space<vmem>>, %arg5: memref<96x96xf32, #tpu.memory_space<vmem>>, %arg6: memref<1x96xf32, #tpu.memory_space<vmem>>, %arg7: memref<8x12xf32, #tpu.memory_space<vmem>>, %arg8: memref<64x16xf32, #tpu.memory_space<vmem>>, %arg9: memref<1x16xf32, #tpu.memory_space<vmem>>, %arg10: memref<16x4xf32, #tpu.memory_space<vmem>>, %arg11: memref<1x4xf32, #tpu.memory_space<vmem>>, %arg12: memref<2x4xf32, #tpu.memory_space<vmem>>) attributes {dimension_semantics = [#tpu.dimension_semantics<parallel>], iteration_bounds = array<i64: 1>, scalar_prefetch = 0 : i64, scratch_operands = 0 : i64, tpu.core_type = #tpu.core_type<tc>, window_params = [{transform_indices = @transform_0, window_bounds = array<i64: 2, 64>}, {pipeline_mode = #tpu.pipeline_mode<synchronous>, transform_indices = @transform_1, window_bounds = array<i64: 64, 128>}, {pipeline_mode = #tpu.pipeline_mode<synchronous>, transform_indices = @transform_2, window_bounds = array<i64: 1, 128>}, {pipeline_mode = #tpu.pipeline_mode<synchronous>, transform_indices = @transform_3, window_bounds = array<i64: 12, 16>}, {pipeline_mode = #tpu.pipeline_mode<synchronous>, transform_indices = @transform_4, window_bounds = array<i64: 96, 96>}, {pipeline_mode = #tpu.pipeline_mode<synchronous>, transform_indices = @transform_5, window_bounds = array<i64: 1, 96>}, {pipeline_mode = #tpu.pipeline_mode<synchronous>, transform_indices = @transform_6, window_bounds = array<i64: 8, 12>}, {pipeline_mode = #tpu.pipeline_mode<synchronous>, transform_indices = @transform_7, window_bounds = array<i64: 64, 16>}, {pipeline_mode = #tpu.pipeline_mode<synchronous>, transform_indices = @transform_8, window_bounds = array<i64: 1, 16>}, {pipeline_mode = #tpu.pipeline_mode<synchronous>, transform_indices = @transform_9, window_bounds = array<i64: 16, 4>}, {pipeline_mode = #tpu.pipeline_mode<synchronous>, transform_indices = @transform_10, window_bounds = array<i64: 1, 4>}, {transform_indices = @transform_11, window_bounds = array<i64: 2, 4>}]} {
    %c0 = arith.constant 0 : index
    %c0_0 = arith.constant 0 : index
    %0 = vector.load %arg1[%c0, %c0_0] : memref<2x64xf32, #tpu.memory_space<vmem>>, vector<2x64xf32>
    %c0_1 = arith.constant 0 : index
    %c0_2 = arith.constant 0 : index
    %1 = vector.load %arg2[%c0_1, %c0_2] : memref<64x128xf32, #tpu.memory_space<vmem>>, vector<64x128xf32>
    %cst = arith.constant dense<0.000000e+00> : vector<2x128xf32>
    %2 = tpu.matmul %0, %1, %cst {dimension_numbers = #tpu.dot_dimension_numbers<[1], [0], [0], [1], [0, 0, 1, 1], [], []>} : vector<2x64xf32>, vector<64x128xf32>, vector<2x128xf32> -> vector<2x128xf32>
    %c0_3 = arith.constant 0 : index
    %c0_4 = arith.constant 0 : index
    %3 = vector.load %arg3[%c0_3, %c0_4] : memref<1x128xf32, #tpu.memory_space<vmem>>, vector<1x128xf32>
    %4 = vector.broadcast %3 : vector<1x128xf32> to vector<2x128xf32>
    %5 = arith.addf %2, %4 : vector<2x128xf32>
    %cst_5 = arith.constant 0.000000e+00 : f32
    %6 = vector.broadcast %cst_5 : f32 to vector<2x128xf32>
    %7 = arith.subf %6, %5 : vector<2x128xf32>
    %8 = math.exp %7 : vector<2x128xf32>
    %cst_6 = arith.constant 1.000000e+00 : f32
    %9 = vector.broadcast %cst_6 : f32 to vector<2x128xf32>
    %10 = arith.addf %9, %8 : vector<2x128xf32>
    %11 = tpu.reciprocal %10 {approx = true} : vector<2x128xf32> -> vector<2x128xf32>
    %c0_7 = arith.constant 0 : index
    %c0_8 = arith.constant 0 : index
    %12 = vector.load %arg4[%c0_7, %c0_8] : memref<12x16xf32, #tpu.memory_space<vmem>>, vector<12x16xf32>
    %13 = vector.extract_strided_slice %11 {offsets = [0, 0], sizes = [2, 16], strides = [1, 1]} : vector<2x128xf32> to vector<2x16xf32>
    %14 = vector.shape_cast %13 : vector<2x16xf32> to vector<2x1x16xf32>
    %15 = vector.shape_cast %12 : vector<12x16xf32> to vector<1x12x16xf32>
    %16 = vector.broadcast %14 : vector<2x1x16xf32> to vector<2x12x16xf32>
    %17 = vector.broadcast %15 : vector<1x12x16xf32> to vector<2x12x16xf32>
    %18 = arith.addf %16, %17 : vector<2x12x16xf32>
    %cst_9 = arith.constant dense<0xFF800000> : vector<2x12xf32>
    %19 = vector.multi_reduction <maximumf>, %18, %cst_9 [2] : vector<2x12x16xf32> to vector<2x12xf32>
    %20 = vector.extract_strided_slice %11 {offsets = [0, 16], sizes = [2, 16], strides = [1, 1]} : vector<2x128xf32> to vector<2x16xf32>
    %21 = vector.shape_cast %20 : vector<2x16xf32> to vector<2x1x16xf32>
    %22 = vector.shape_cast %12 : vector<12x16xf32> to vector<1x12x16xf32>
    %23 = vector.broadcast %21 : vector<2x1x16xf32> to vector<2x12x16xf32>
    %24 = vector.broadcast %22 : vector<1x12x16xf32> to vector<2x12x16xf32>
    %25 = arith.addf %23, %24 : vector<2x12x16xf32>
    %cst_10 = arith.constant dense<0xFF800000> : vector<2x12xf32>
    %26 = vector.multi_reduction <maximumf>, %25, %cst_10 [2] : vector<2x12x16xf32> to vector<2x12xf32>
    %27 = vector.extract_strided_slice %11 {offsets = [0, 32], sizes = [2, 16], strides = [1, 1]} : vector<2x128xf32> to vector<2x16xf32>
    %28 = vector.shape_cast %27 : vector<2x16xf32> to vector<2x1x16xf32>
    %29 = vector.shape_cast %12 : vector<12x16xf32> to vector<1x12x16xf32>
    %30 = vector.broadcast %28 : vector<2x1x16xf32> to vector<2x12x16xf32>
    %31 = vector.broadcast %29 : vector<1x12x16xf32> to vector<2x12x16xf32>
    %32 = arith.addf %30, %31 : vector<2x12x16xf32>
    %cst_11 = arith.constant dense<0xFF800000> : vector<2x12xf32>
    %33 = vector.multi_reduction <maximumf>, %32, %cst_11 [2] : vector<2x12x16xf32> to vector<2x12xf32>
    %34 = vector.extract_strided_slice %11 {offsets = [0, 48], sizes = [2, 16], strides = [1, 1]} : vector<2x128xf32> to vector<2x16xf32>
    %35 = vector.shape_cast %34 : vector<2x16xf32> to vector<2x1x16xf32>
    %36 = vector.shape_cast %12 : vector<12x16xf32> to vector<1x12x16xf32>
    %37 = vector.broadcast %35 : vector<2x1x16xf32> to vector<2x12x16xf32>
    %38 = vector.broadcast %36 : vector<1x12x16xf32> to vector<2x12x16xf32>
    %39 = arith.addf %37, %38 : vector<2x12x16xf32>
    %cst_12 = arith.constant dense<0xFF800000> : vector<2x12xf32>
    %40 = vector.multi_reduction <maximumf>, %39, %cst_12 [2] : vector<2x12x16xf32> to vector<2x12xf32>
    %41 = vector.extract_strided_slice %11 {offsets = [0, 64], sizes = [2, 16], strides = [1, 1]} : vector<2x128xf32> to vector<2x16xf32>
    %42 = vector.shape_cast %41 : vector<2x16xf32> to vector<2x1x16xf32>
    %43 = vector.shape_cast %12 : vector<12x16xf32> to vector<1x12x16xf32>
    %44 = vector.broadcast %42 : vector<2x1x16xf32> to vector<2x12x16xf32>
    %45 = vector.broadcast %43 : vector<1x12x16xf32> to vector<2x12x16xf32>
    %46 = arith.addf %44, %45 : vector<2x12x16xf32>
    %cst_13 = arith.constant dense<0xFF800000> : vector<2x12xf32>
    %47 = vector.multi_reduction <maximumf>, %46, %cst_13 [2] : vector<2x12x16xf32> to vector<2x12xf32>
    %48 = vector.extract_strided_slice %11 {offsets = [0, 80], sizes = [2, 16], strides = [1, 1]} : vector<2x128xf32> to vector<2x16xf32>
    %49 = vector.shape_cast %48 : vector<2x16xf32> to vector<2x1x16xf32>
    %50 = vector.shape_cast %12 : vector<12x16xf32> to vector<1x12x16xf32>
    %51 = vector.broadcast %49 : vector<2x1x16xf32> to vector<2x12x16xf32>
    %52 = vector.broadcast %50 : vector<1x12x16xf32> to vector<2x12x16xf32>
    %53 = arith.addf %51, %52 : vector<2x12x16xf32>
    %cst_14 = arith.constant dense<0xFF800000> : vector<2x12xf32>
    %54 = vector.multi_reduction <maximumf>, %53, %cst_14 [2] : vector<2x12x16xf32> to vector<2x12xf32>
    %55 = vector.extract_strided_slice %11 {offsets = [0, 96], sizes = [2, 16], strides = [1, 1]} : vector<2x128xf32> to vector<2x16xf32>
    %56 = vector.shape_cast %55 : vector<2x16xf32> to vector<2x1x16xf32>
    %57 = vector.shape_cast %12 : vector<12x16xf32> to vector<1x12x16xf32>
    %58 = vector.broadcast %56 : vector<2x1x16xf32> to vector<2x12x16xf32>
    %59 = vector.broadcast %57 : vector<1x12x16xf32> to vector<2x12x16xf32>
    %60 = arith.addf %58, %59 : vector<2x12x16xf32>
    %cst_15 = arith.constant dense<0xFF800000> : vector<2x12xf32>
    %61 = vector.multi_reduction <maximumf>, %60, %cst_15 [2] : vector<2x12x16xf32> to vector<2x12xf32>
    %62 = vector.extract_strided_slice %11 {offsets = [0, 112], sizes = [2, 16], strides = [1, 1]} : vector<2x128xf32> to vector<2x16xf32>
    %63 = vector.shape_cast %62 : vector<2x16xf32> to vector<2x1x16xf32>
    %64 = vector.shape_cast %12 : vector<12x16xf32> to vector<1x12x16xf32>
    %65 = vector.broadcast %63 : vector<2x1x16xf32> to vector<2x12x16xf32>
    %66 = vector.broadcast %64 : vector<1x12x16xf32> to vector<2x12x16xf32>
    %67 = arith.addf %65, %66 : vector<2x12x16xf32>
    %cst_16 = arith.constant dense<0xFF800000> : vector<2x12xf32>
    %68 = vector.multi_reduction <maximumf>, %67, %cst_16 [2] : vector<2x12x16xf32> to vector<2x12xf32>
    %69 = tpu.concatenate %19, %26, %33, %40, %47, %54, %61, %68 in 1 : vector<2x12xf32>, vector<2x12xf32>, vector<2x12xf32>, vector<2x12xf32>, vector<2x12xf32>, vector<2x12xf32>, vector<2x12xf32>, vector<2x12xf32> -> vector<2x96xf32>
    %c0_17 = arith.constant 0 : index
    %c0_18 = arith.constant 0 : index
    %70 = vector.load %arg5[%c0_17, %c0_18] : memref<96x96xf32, #tpu.memory_space<vmem>>, vector<96x96xf32>
    %cst_19 = arith.constant dense<0.000000e+00> : vector<2x96xf32>
    %71 = tpu.matmul %69, %70, %cst_19 {dimension_numbers = #tpu.dot_dimension_numbers<[1], [0], [0], [1], [0, 0, 1, 1], [], []>} : vector<2x96xf32>, vector<96x96xf32>, vector<2x96xf32> -> vector<2x96xf32>
    %c0_20 = arith.constant 0 : index
    %c0_21 = arith.constant 0 : index
    %72 = vector.load %arg6[%c0_20, %c0_21] : memref<1x96xf32, #tpu.memory_space<vmem>>, vector<1x96xf32>
    %73 = vector.broadcast %72 : vector<1x96xf32> to vector<2x96xf32>
    %74 = arith.addf %71, %73 : vector<2x96xf32>
    %cst_22 = arith.constant 0.000000e+00 : f32
    %75 = vector.broadcast %cst_22 : f32 to vector<2x96xf32>
    %76 = arith.subf %75, %74 : vector<2x96xf32>
    %77 = math.exp %76 : vector<2x96xf32>
    %cst_23 = arith.constant 1.000000e+00 : f32
    %78 = vector.broadcast %cst_23 : f32 to vector<2x96xf32>
    %79 = arith.addf %78, %77 : vector<2x96xf32>
    %80 = tpu.reciprocal %79 {approx = true} : vector<2x96xf32> -> vector<2x96xf32>
    %c0_24 = arith.constant 0 : index
    %c0_25 = arith.constant 0 : index
    %81 = vector.load %arg7[%c0_24, %c0_25] : memref<8x12xf32, #tpu.memory_space<vmem>>, vector<8x12xf32>
    %82 = vector.extract_strided_slice %80 {offsets = [0, 0], sizes = [2, 12], strides = [1, 1]} : vector<2x96xf32> to vector<2x12xf32>
    %83 = vector.shape_cast %82 : vector<2x12xf32> to vector<2x1x12xf32>
    %84 = vector.shape_cast %81 : vector<8x12xf32> to vector<1x8x12xf32>
    %85 = vector.broadcast %83 : vector<2x1x12xf32> to vector<2x8x12xf32>
    %86 = vector.broadcast %84 : vector<1x8x12xf32> to vector<2x8x12xf32>
    %87 = arith.addf %85, %86 : vector<2x8x12xf32>
    %cst_26 = arith.constant dense<0xFF800000> : vector<2x8xf32>
    %88 = vector.multi_reduction <maximumf>, %87, %cst_26 [2] : vector<2x8x12xf32> to vector<2x8xf32>
    %89 = vector.extract_strided_slice %80 {offsets = [0, 12], sizes = [2, 12], strides = [1, 1]} : vector<2x96xf32> to vector<2x12xf32>
    %90 = vector.shape_cast %89 : vector<2x12xf32> to vector<2x1x12xf32>
    %91 = vector.shape_cast %81 : vector<8x12xf32> to vector<1x8x12xf32>
    %92 = vector.broadcast %90 : vector<2x1x12xf32> to vector<2x8x12xf32>
    %93 = vector.broadcast %91 : vector<1x8x12xf32> to vector<2x8x12xf32>
    %94 = arith.addf %92, %93 : vector<2x8x12xf32>
    %cst_27 = arith.constant dense<0xFF800000> : vector<2x8xf32>
    %95 = vector.multi_reduction <maximumf>, %94, %cst_27 [2] : vector<2x8x12xf32> to vector<2x8xf32>
    %96 = vector.extract_strided_slice %80 {offsets = [0, 24], sizes = [2, 12], strides = [1, 1]} : vector<2x96xf32> to vector<2x12xf32>
    %97 = vector.shape_cast %96 : vector<2x12xf32> to vector<2x1x12xf32>
    %98 = vector.shape_cast %81 : vector<8x12xf32> to vector<1x8x12xf32>
    %99 = vector.broadcast %97 : vector<2x1x12xf32> to vector<2x8x12xf32>
    %100 = vector.broadcast %98 : vector<1x8x12xf32> to vector<2x8x12xf32>
    %101 = arith.addf %99, %100 : vector<2x8x12xf32>
    %cst_28 = arith.constant dense<0xFF800000> : vector<2x8xf32>
    %102 = vector.multi_reduction <maximumf>, %101, %cst_28 [2] : vector<2x8x12xf32> to vector<2x8xf32>
    %103 = vector.extract_strided_slice %80 {offsets = [0, 36], sizes = [2, 12], strides = [1, 1]} : vector<2x96xf32> to vector<2x12xf32>
    %104 = vector.shape_cast %103 : vector<2x12xf32> to vector<2x1x12xf32>
    %105 = vector.shape_cast %81 : vector<8x12xf32> to vector<1x8x12xf32>
    %106 = vector.broadcast %104 : vector<2x1x12xf32> to vector<2x8x12xf32>
    %107 = vector.broadcast %105 : vector<1x8x12xf32> to vector<2x8x12xf32>
    %108 = arith.addf %106, %107 : vector<2x8x12xf32>
    %cst_29 = arith.constant dense<0xFF800000> : vector<2x8xf32>
    %109 = vector.multi_reduction <maximumf>, %108, %cst_29 [2] : vector<2x8x12xf32> to vector<2x8xf32>
    %110 = vector.extract_strided_slice %80 {offsets = [0, 48], sizes = [2, 12], strides = [1, 1]} : vector<2x96xf32> to vector<2x12xf32>
    %111 = vector.shape_cast %110 : vector<2x12xf32> to vector<2x1x12xf32>
    %112 = vector.shape_cast %81 : vector<8x12xf32> to vector<1x8x12xf32>
    %113 = vector.broadcast %111 : vector<2x1x12xf32> to vector<2x8x12xf32>
    %114 = vector.broadcast %112 : vector<1x8x12xf32> to vector<2x8x12xf32>
    %115 = arith.addf %113, %114 : vector<2x8x12xf32>
    %cst_30 = arith.constant dense<0xFF800000> : vector<2x8xf32>
    %116 = vector.multi_reduction <maximumf>, %115, %cst_30 [2] : vector<2x8x12xf32> to vector<2x8xf32>
    %117 = vector.extract_strided_slice %80 {offsets = [0, 60], sizes = [2, 12], strides = [1, 1]} : vector<2x96xf32> to vector<2x12xf32>
    %118 = vector.shape_cast %117 : vector<2x12xf32> to vector<2x1x12xf32>
    %119 = vector.shape_cast %81 : vector<8x12xf32> to vector<1x8x12xf32>
    %120 = vector.broadcast %118 : vector<2x1x12xf32> to vector<2x8x12xf32>
    %121 = vector.broadcast %119 : vector<1x8x12xf32> to vector<2x8x12xf32>
    %122 = arith.addf %120, %121 : vector<2x8x12xf32>
    %cst_31 = arith.constant dense<0xFF800000> : vector<2x8xf32>
    %123 = vector.multi_reduction <maximumf>, %122, %cst_31 [2] : vector<2x8x12xf32> to vector<2x8xf32>
    %124 = vector.extract_strided_slice %80 {offsets = [0, 72], sizes = [2, 12], strides = [1, 1]} : vector<2x96xf32> to vector<2x12xf32>
    %125 = vector.shape_cast %124 : vector<2x12xf32> to vector<2x1x12xf32>
    %126 = vector.shape_cast %81 : vector<8x12xf32> to vector<1x8x12xf32>
    %127 = vector.broadcast %125 : vector<2x1x12xf32> to vector<2x8x12xf32>
    %128 = vector.broadcast %126 : vector<1x8x12xf32> to vector<2x8x12xf32>
    %129 = arith.addf %127, %128 : vector<2x8x12xf32>
    %cst_32 = arith.constant dense<0xFF800000> : vector<2x8xf32>
    %130 = vector.multi_reduction <maximumf>, %129, %cst_32 [2] : vector<2x8x12xf32> to vector<2x8xf32>
    %131 = vector.extract_strided_slice %80 {offsets = [0, 84], sizes = [2, 12], strides = [1, 1]} : vector<2x96xf32> to vector<2x12xf32>
    %132 = vector.shape_cast %131 : vector<2x12xf32> to vector<2x1x12xf32>
    %133 = vector.shape_cast %81 : vector<8x12xf32> to vector<1x8x12xf32>
    %134 = vector.broadcast %132 : vector<2x1x12xf32> to vector<2x8x12xf32>
    %135 = vector.broadcast %133 : vector<1x8x12xf32> to vector<2x8x12xf32>
    %136 = arith.addf %134, %135 : vector<2x8x12xf32>
    %cst_33 = arith.constant dense<0xFF800000> : vector<2x8xf32>
    %137 = vector.multi_reduction <maximumf>, %136, %cst_33 [2] : vector<2x8x12xf32> to vector<2x8xf32>
    %138 = tpu.concatenate %88, %95, %102, %109, %116, %123, %130, %137 in 1 : vector<2x8xf32>, vector<2x8xf32>, vector<2x8xf32>, vector<2x8xf32>, vector<2x8xf32>, vector<2x8xf32>, vector<2x8xf32>, vector<2x8xf32> -> vector<2x64xf32>
    %c0_34 = arith.constant 0 : index
    %c0_35 = arith.constant 0 : index
    %139 = vector.load %arg8[%c0_34, %c0_35] : memref<64x16xf32, #tpu.memory_space<vmem>>, vector<64x16xf32>
    %cst_36 = arith.constant dense<0.000000e+00> : vector<2x16xf32>
    %140 = tpu.matmul %138, %139, %cst_36 {dimension_numbers = #tpu.dot_dimension_numbers<[1], [0], [0], [1], [0, 0, 1, 1], [], []>} : vector<2x64xf32>, vector<64x16xf32>, vector<2x16xf32> -> vector<2x16xf32>
    %c0_37 = arith.constant 0 : index
    %c0_38 = arith.constant 0 : index
    %141 = vector.load %arg9[%c0_37, %c0_38] : memref<1x16xf32, #tpu.memory_space<vmem>>, vector<1x16xf32>
    %142 = vector.broadcast %141 : vector<1x16xf32> to vector<2x16xf32>
    %143 = arith.addf %140, %142 : vector<2x16xf32>
    %cst_39 = arith.constant 0.000000e+00 : f32
    %144 = vector.broadcast %cst_39 : f32 to vector<2x16xf32>
    %145 = arith.subf %144, %143 : vector<2x16xf32>
    %146 = math.exp %145 : vector<2x16xf32>
    %cst_40 = arith.constant 1.000000e+00 : f32
    %147 = vector.broadcast %cst_40 : f32 to vector<2x16xf32>
    %148 = arith.addf %147, %146 : vector<2x16xf32>
    %149 = tpu.reciprocal %148 {approx = true} : vector<2x16xf32> -> vector<2x16xf32>
    %c0_41 = arith.constant 0 : index
    %c0_42 = arith.constant 0 : index
    %150 = vector.load %arg10[%c0_41, %c0_42] : memref<16x4xf32, #tpu.memory_space<vmem>>, vector<16x4xf32>
    %cst_43 = arith.constant dense<0.000000e+00> : vector<2x4xf32>
    %151 = tpu.matmul %149, %150, %cst_43 {dimension_numbers = #tpu.dot_dimension_numbers<[1], [0], [0], [1], [0, 0, 1, 1], [], []>} : vector<2x16xf32>, vector<16x4xf32>, vector<2x4xf32> -> vector<2x4xf32>
    %c0_44 = arith.constant 0 : index
    %c0_45 = arith.constant 0 : index
    %152 = vector.load %arg11[%c0_44, %c0_45] : memref<1x4xf32, #tpu.memory_space<vmem>>, vector<1x4xf32>
    %153 = vector.broadcast %152 : vector<1x4xf32> to vector<2x4xf32>
    %154 = arith.addf %151, %153 : vector<2x4xf32>
    %c0_46 = arith.constant 0 : index
    %c0_47 = arith.constant 0 : index
    %155 = vector.load %arg12[%c0_46, %c0_47] : memref<2x4xf32, #tpu.memory_space<vmem>>, vector<2x4xf32>
    tpu.vector_store %arg12[%c0_46, %c0_47], %154 {strides = array<i32>} : memref<2x4xf32, #tpu.memory_space<vmem>>, vector<2x4xf32>,
    return
  }
  func.func @transform_0(%arg0: i32) -> (i32, i32) {
    %c0_i32 = arith.constant 0 : i32
    %c0_i32_0 = arith.constant 0 : i32
    return %arg0, %c0_i32 : i32, i32
  }
  func.func @transform_1(%arg0: i32) -> (i32, i32) {
    %c0_i32 = arith.constant 0 : i32
    %c0_i32_0 = arith.constant 0 : i32
    %c0_i32_1 = arith.constant 0 : i32
    return %c0_i32, %c0_i32_0 : i32, i32
  }
  func.func @transform_2(%arg0: i32) -> (i32, i32) {
    %c0_i32 = arith.constant 0 : i32
    %c0_i32_0 = arith.constant 0 : i32
    %c0_i32_1 = arith.constant 0 : i32
    return %c0_i32, %c0_i32_0 : i32, i32
  }
  func.func @transform_3(%arg0: i32) -> (i32, i32) {
    %c0_i32 = arith.constant 0 : i32
    %c0_i32_0 = arith.constant 0 : i32
    %c0_i32_1 = arith.constant 0 : i32
    return %c0_i32, %c0_i32_0 : i32, i32
  }
  func.func @transform_4(%arg0: i32) -> (i32, i32) {
    %c0_i32 = arith.constant 0 : i32
    %c0_i32_0 = arith.constant 0 : i32
    %c0_i32_1 = arith.constant 0 : i32
    return %c0_i32, %c0_i32_0 : i32, i32
  }
  func.func @transform_5(%arg0: i32) -> (i32, i32) {
    %c0_i32 = arith.constant 0 : i32
    %c0_i32_0 = arith.constant 0 : i32
    %c0_i32_1 = arith.constant 0 : i32
    return %c0_i32, %c0_i32_0 : i32, i32
  }
  func.func @transform_6(%arg0: i32) -> (i32, i32) {
    %c0_i32 = arith.constant 0 : i32
    %c0_i32_0 = arith.constant 0 : i32
    %c0_i32_1 = arith.constant 0 : i32
    return %c0_i32, %c0_i32_0 : i32, i32
  }
  func.func @transform_7(%arg0: i32) -> (i32, i32) {
    %c0_i32 = arith.constant 0 : i32
    %c0_i32_0 = arith.constant 0 : i32
    %c0_i32_1 = arith.constant 0 : i32
    return %c0_i32, %c0_i32_0 : i32, i32
  }
  func.func @transform_8(%arg0: i32) -> (i32, i32) {
    %c0_i32 = arith.constant 0 : i32
    %c0_i32_0 = arith.constant 0 : i32
    %c0_i32_1 = arith.constant 0 : i32
    return %c0_i32, %c0_i32_0 : i32, i32
  }
  func.func @transform_9(%arg0: i32) -> (i32, i32) {
    %c0_i32 = arith.constant 0 : i32
    %c0_i32_0 = arith.constant 0 : i32
    %c0_i32_1 = arith.constant 0 : i32
    return %c0_i32, %c0_i32_0 : i32, i32
  }
  func.func @transform_10(%arg0: i32) -> (i32, i32) {
    %c0_i32 = arith.constant 0 : i32
    %c0_i32_0 = arith.constant 0 : i32
    %c0_i32_1 = arith.constant 0 : i32
    return %c0_i32, %c0_i32_0 : i32, i32
  }
  func.func @transform_11(%arg0: i32) -> (i32, i32) {
    %c0_i32 = arith.constant 0 : i32
    %c0_i32_0 = arith.constant 0 : i32
    return %arg0, %c0_i32 : i32, i32
  }
}

</mosaic_0001>

<bundles_post_ra>
// kernel: tpu_custom_call.1
= control target key start
LH: loop header
LB: loop body
LE: loop exit
PB: predicated region body
PF: predicated region fallthrough
CT: control target
= control target key end

     0   :  { %16 = vsyncpa [#allocation3], 0  ;;  %s2121_s0 = inlined_call_operand.hbm [shape: f32[2,64], index: 0, kind: input, shape index: {}]   ;;  %s2122_s1 = inlined_call_operand.hbm [shape: f32[64,128], index: 1, kind: input, shape index: {}]   ;;  %s2123_s2 = inlined_call_operand.hbm [shape: f32[1,128], index: 2, kind: input, shape index: {}]   ;;  %s2124_s3 = inlined_call_operand.hbm [shape: f32[12,16], index: 3, kind: input, shape index: {}]   ;;  %s2125_s4 = inlined_call_operand.vmem [shape: f32[96,96], index: 4, kind: input, shape index: {}]   ;;  %s2126_s5 = inlined_call_operand.hbm [shape: f32[1,96], index: 5, kind: input, shape index: {}]   ;;  %s2127_s6 = inlined_call_operand.hbm [shape: f32[8,12], index: 6, kind: input, shape index: {}]   ;;  %s2128_s7 = inlined_call_operand.vmem [shape: f32[64,16], index: 7, kind: input, shape index: {}]   ;;  %s2129_s8 = inlined_call_operand.hbm [shape: f32[1,16], index: 8, kind: input, shape index: {}]   ;;  %s2130_s9 = inlined_call_operand.vmem [shape: f32[16,4], index: 9, kind: input, shape index: {}]   ;;  %s2131_s10 = inlined_call_operand.vmem [shape: f32[1,4], index: 10, kind: input, shape index: {}]   ;;  %s2132_s11 = inlined_call_operand.hbm [shape: f32[2,4], index: 11, kind: output, shape index: {}]  }
   0x1   :  { %17 = vsyncpa [#allocation6], 0 }
   0x2   :  { %18 = vsyncpa [#allocation9], 0 }
   0x3   :  { %19 = vsyncpa [#allocation12], 0 }
   0x4   :  { %20 = vsyncpa [#allocation4], 0  ;;  %s1525_s17 = smov [#allocation5]  }
   0x5   :  { %s36_s18 = sshll.u32 %s1525_s17, 4  ;;  %s37_s18 = int_to_ptr.vmem [resolvable:$true] %s36_s18 }
   0x6   :  { %s1363_s19 = scalar_lea.vmem %s37_s18, 1024  ;;  %p1368_p1 = scmp.lt.s32.totalorder %s37_s18, %s37_s18 }
   0x7   :  { %p1364_p0 = scmp.ne.s32.totalorder %s37_s18, %s1363_s19  ;;  %p1369_p2 = scmp.lt.s32.totalorder %s1363_s19, %s1363_s19 }
   0x9   :  { %p1370_p3 = por %p1369_p2, %p1368_p1 }
   0xb   :  { %p1371_p4 = pnand %p1370_p3, %p1364_p0 }
   0xd   :  { %1374 = shalt.err (!%p1371_p4)
}
   0xe   :  { %s1526_s20 = smov 128   ;;  %s1527_s21 = smov 8  }
   0xf   :  { %42 = dma.hbm_to_vmem [thread:$0]  %s2122_s1, 1024, %s37_s18, [#allocation6], %s1526_s20, %s1526_s20, %s1527_s21  }
  0x10   :  { %s1528_s24 = smov [#allocation8]   ;;  %s1529_s26 = smov [#allocation11]  }
  0x11   :  { %s58_s25 = sshll.u32 %s1528_s24, 4  ;;  %s83_s27 = sshll.u32 %s1529_s26, 4  ;;  %s59_s25 = int_to_ptr.vmem [resolvable:$true] %s58_s25  ;;  %s84_s27 = int_to_ptr.vmem [resolvable:$true] %s83_s27 }
  0x12   :  { %s1383_s28 = scalar_lea.vmem %s59_s25, 256  ;;  %p1388_p6 = scmp.lt.s32.totalorder %s59_s25, %s59_s25 }
  0x13   :  { %p1384_p5 = scmp.ne.s32.totalorder %s59_s25, %s1383_s28  ;;  %p1389_p7 = scmp.lt.s32.totalorder %s1383_s28, %s1383_s28 }
  0x15   :  { %p1390_p8 = por %p1389_p7, %p1388_p6 }
  0x17   :  { %p1391_p9 = pnand %p1390_p8, %p1384_p5 }
  0x19   :  { %1394 = shalt.err (!%p1391_p9)
}
  0x1a   :  { %64 = dma.hbm_to_vmem [thread:$0]  %s2124_s3, 256, %s59_s25, [#allocation9], %s1526_s20, %s1526_s20, %s1527_s21  }
  0x1b   :  { %s1403_s12 = scalar_lea.vmem %s84_s27, 128  ;;  %p1408_p11 = scmp.lt.s32.totalorder %s84_s27, %s84_s27 }
  0x1c   :  { %p1404_p10 = scmp.ne.s32.totalorder %s84_s27, %s1403_s12  ;;  %p1409_p12 = scmp.lt.s32.totalorder %s1403_s12, %s1403_s12 }
  0x1e   :  { %p1410_p13 = por %p1409_p12, %p1408_p11 }
  0x20   :  { %p1411_p0 = pnand %p1410_p13, %p1404_p10 }
  0x22   :  { %1414 = shalt.err (!%p1411_p0)
}
  0x23   :  { %86 = dma.hbm_to_vmem [thread:$0]  %s2127_s6, 128, %s84_s27, [#allocation12]  }
  0x24   :  { %s1530_s14 = smov [#allocation2]   ;;  %s1531_s16 = smov [#allocation7]  }
  0x25   :  { %s27_s15 = sshll.u32 %s1530_s14, 4  ;;  %s49_s17 = sshll.u32 %s1531_s16, 4  ;;  %s28_s15 = int_to_ptr.vmem [resolvable:$true] %s27_s15  ;;  %s50_s17 = int_to_ptr.vmem [resolvable:$true] %s49_s17 }
  0x26   :  { %s1423_s18 = scalar_lea.vmem %s28_s15, 32  ;;  %p1428_p2 = scmp.lt.s32.totalorder %s28_s15, %s28_s15 }
  0x27   :  { %p1424_p1 = scmp.ne.s32.totalorder %s28_s15, %s1423_s18  ;;  %p1429_p3 = scmp.lt.s32.totalorder %s1423_s18, %s1423_s18 }
  0x29   :  { %p1430_p4 = por %p1429_p3, %p1428_p2 }
  0x2b   :  { %p1431_p5 = pnand %p1430_p4, %p1424_p1 }
  0x2d   :  { %1434 = shalt.err (!%p1431_p5)
}
  0x2e   :  { %30 = dma.hbm_to_vmem [thread:$0]  %s2121_s0, 32, %s28_s15, [#allocation3]  }
  0x2f   :  { %s1443_s20 = scalar_lea.vmem %s50_s17, 16  ;;  %s1447_s6 = scalar_lea.vmem %s50_s17, 32 }
  0x30   :  { %p1444_p6 = scmp.ne.s32.totalorder %s50_s17, %s1443_s20  ;;  %p1448_p7 = scmp.lt.s32.totalorder %s50_s17, %s50_s17 }
  0x31   :  { %p1449_p8 = scmp.lt.s32.totalorder %s1447_s6, %s1443_s20 }
  0x33   :  { %p1450_p9 = por %p1449_p8, %p1448_p7 }
  0x35   :  { %p1451_p10 = pnand %p1450_p9, %p1444_p6 }
  0x37   :  { %1454 = shalt.err (!%p1451_p10)
}
  0x38   :  { %52 = dma.hbm_to_vmem [thread:$0]  %s2123_s2, 16, %s50_s17, [#allocation6]  }
  0x39   :  { %s1532_s23 = smov [#allocation10]   ;;  %s1533_s25 = smov [#allocation13]  }
  0x3a   :  { %s73_s24 = sshll.u32 %s1532_s23, 4  ;;  %s95_s26 = sshll.u32 %s1533_s25, 4  ;;  %s74_s24 = int_to_ptr.vmem [resolvable:$true] %s73_s24  ;;  %s96_s26 = int_to_ptr.vmem [resolvable:$true] %s95_s26 }
  0x3b   :  { %s1463_s27 = scalar_lea.vmem %s74_s24, 16  ;;  %s1467_s0 = scalar_lea.vmem %s74_s24, 32 }
  0x3c   :  { %p1464_p11 = scmp.ne.s32.totalorder %s74_s24, %s1463_s27  ;;  %p1468_p12 = scmp.lt.s32.totalorder %s74_s24, %s74_s24 }
  0x3d   :  { %p1469_p13 = scmp.lt.s32.totalorder %s1467_s0, %s1463_s27 }
  0x3f   :  { %p1470_p0 = por %p1469_p13, %p1468_p12 }
  0x41   :  { %p1471_p1 = pnand %p1470_p0, %p1464_p11 }
  0x43   :  { %1474 = shalt.err (!%p1471_p1)
}
  0x44   :  { %76 = dma.hbm_to_vmem [thread:$0]  %s2126_s5, 16, %s74_s24, [#allocation9]  }
  0x45   :  { %s1483_s30 = scalar_lea.vmem %s96_s26, 16  ;;  %s1487_s2 = scalar_lea.vmem %s96_s26, 32 }
  0x46   :  { %p1484_p2 = scmp.ne.s32.totalorder %s96_s26, %s1483_s30  ;;  %p1488_p3 = scmp.lt.s32.totalorder %s96_s26, %s96_s26 }
  0x47   :  { %p1489_p4 = scmp.lt.s32.totalorder %s1487_s2, %s1483_s30 }
  0x49   :  { %p1490_p5 = por %p1489_p4, %p1488_p3 }
  0x4b   :  { %p1491_p6 = pnand %p1490_p5, %p1484_p2 }
  0x4d   :  { %1494 = shalt.err (!%p1491_p6)
}
  0x4e   :  { %98 = dma.hbm_to_vmem [thread:$0]  %s2129_s8, 16, %s96_s26, [#allocation12]  }
  0x4f   :  { %1515 = dma.done.wait [#allocation3], 32  }
  0x50   :  { %1516 = vsyncadd [#allocation3], 4294967264 }
  0x51   :  { %1517 = dma.done.wait [#allocation6], 1040  }
  0x52   :  { %1518 = vsyncadd [#allocation6], 4294966256 }
  0x53   :  { %1519 = dma.done.wait [#allocation9], 272  }
  0x54   :  { %1520 = vsyncadd [#allocation9], 4294967024 }
  0x55   :  { %1521 = dma.done.wait [#allocation12], 144  }
  0x56   :  { %1522 = vsyncadd [#allocation12], 4294967152  ;;  %v1534_v0 = vmov 0.0   ;;  %vm2134_vm0 = vmmov 0   ;;  %v132_v1 = vld [vmem:[#allocation5 + $0x38] sm:$0xff]  ;;  %v131_v2 = vld [vmem:[#allocation5 + $0x30] sm:$0xff]  ;;  %v225_v22 = vlaneseq }
  0x57   :  { %1245 = vmatprep.subr.mxu0 %v1534_v0  ;;  %1261 = vmatprep.mubr.msk.f32.mxu0 %vm2134_vm0, %v1534_v0  ;;  %v130_v3 = vld [vmem:[#allocation5 + $0x28] sm:$0xff]  ;;  %v129_v5 = vld [vmem:[#allocation5 + $0x20] sm:$0xff]  ;;  %s1536_s5 = smov 32   ;;  %s1537_s8 = smov 16   ;;  %v128_v7 = vld [vmem:[#allocation5 + $0x18] sm:$0xff]  ;;  %vm2133_vm1 = vcmask 523264  }
  0x58   :  { %1264 = vmatprep.subr.mxu1 %v1534_v0  ;;  %1288 = vmatprep.mubr.msk.f32.mxu1 %vm2134_vm0, %v1534_v0  ;;  %v1639_v4 = vld [vmem:[#allocation8] sm:$0xff]  ;;  %v1644_v6 = vld [vmem:[#allocation8 + $0x8] sm:$0xf]  ;;  %v127_v8 = vld [vmem:[#allocation5 + $0x10] sm:$0xff]  ;;  %s1538_s13 = smov 48   ;;  %s1539_s14 = smov 64  }
  0x59   :  { %1246 = vmatpush3.msra.mxu0 %v132_v1  ;;  %298 = vrot.lane.b32.xlu1 %v1639_v4, %s1536_s5  ;;  %v126_v9 = vld [vmem:[#allocation5 + $0x8] sm:$0xff]  ;;  %v125_v10 = vld [vmem:[#allocation5] sm:$0xff]  ;;  %v124_v11 = vld [vmem:[#allocation2] sm:$0x3]  ;;  %s1540_s15 = smov 80   ;;  %s1541_s16 = smov 96  }
  0x5a   :  { %1247 = vmatprep.subr.mxu0 %v1534_v0  ;;  %274 = vrot.lane.b32.xlu0 %v1639_v4, %s1537_s8  ;;  %s1542_s17 = smov 112   ;;  %v1203_v12 = vld [vmem:[#allocation7] ss:$0 sm:$0xff]  ;;  %v1543_v20 = vmov 1966171168   ;;  %v1670_v24 = vshrl.u32 %v225_v22, 7 }
  0x5b   :  { %1248 = vmatpush3.msra.mxu0 %v131_v2  ;;  %v223_v21 = vunpack.c.l.s4 %v1543_v20  ;;  %vm262_vm2 = vcmask 125952   ;;  %vm258_vm3 = vcmask 130048   ;;  %vm284_vm4 = vcmask 261248   ;;  %s1545_s18 = smov 36   ;;  %s1546_s3 = smov 24  }
  0x5c   :  { %1249 = vmatprep.subr.mxu0 %v1534_v0  ;;  %v1682_v31 = vsub.s32 0, %v1670_v24  ;;  %vm288_vm5 = vcmask 257152   ;;  %vm308_vm6 = vcmask 392448   ;;  %vm312_vm7 = vcmask 388352   ;;  %s1547_s19 = smov 60   ;;  %s1549_s20 = smov 84  }
  0x5d   :  { %1250 = vmatpush3.msra.mxu0 %v130_v3  ;;  %300 = vrot.lane.b32.xlu1 %v1644_v6, %s1536_s5  ;;  %v224_v23 = vunpack.c.0.s8 %v223_v21  ;;  %vm332_vm8 = vcmask 523648   ;;  %vm336_vm9 = vcmask 519552   ;;  %vm356_vm10 = vcmask 654848  }
  0x5e   :  { %1251 = vmatprep.subr.mxu0 %v1534_v0  ;;  %276 = vrot.lane.b32.xlu0 %v1644_v6, %s1537_s8  ;;  %vm360_vm11 = vcmask 650752   ;;  %vm380_vm12 = vcmask 786048   ;;  %vm384_vm13 = vcmask 781952   ;;  %vm404_vm14 = vcmask 917248  }
  0x5f   :  { %1252 = vmatpush3.msra.mxu0 %v129_v5  ;;  %v1673_v25 = vsub.s32 %v224_v23, %v1670_v24  ;;  %vm408_vm15 = vcmask 913152  }
  0x60   :  { %1253 = vmatprep.subr.mxu0 %v1534_v0 }
  0x61   :  { %1254 = vmatpush3.msra.mxu0 %v128_v7  ;;  %324 = vrot.lane.b32.xlu1 %v1644_v6, %s1538_s13 }
  0x62   :  { %1255 = vmatprep.subr.mxu0 %v1534_v0  ;;  %322 = vrot.lane.b32.xlu0 %v1639_v4, %s1538_s13 }
  0x63   :  { %1256 = vmatpush3.msra.mxu0 %v127_v8 }
  0x64   :  { %1257 = vmatprep.subr.mxu0 %v1534_v0 }
  0x65   :  { %1258 = vmatpush3.msra.mxu0 %v126_v9  ;;  %348 = vrot.lane.b32.xlu1 %v1644_v6, %s1539_s14 }
  0x66   :  { %1259 = vmatprep.subr.mxu0 %v1534_v0  ;;  %346 = vrot.lane.b32.xlu0 %v1639_v4, %s1539_s14 }
  0x67   :  { %1260 = vmatpush3.msra.mxu0 %v125_v10 }
  0x68   :  { %1262 = vmatmul.mubr.msk.f32.vlgmr.msra.gmra.mxu0 %vm2133_vm1, %v124_v11  ;;  %1291 = vmatprep.subr.mxu0 %v1534_v0  ;;  %vm428_vm1 = vcmask 1048448  }
  0x69   :  { %1307 = vmatprep.mubr.msk.f32.mxu0 %vm2134_vm0, %v1534_v0  ;;  %372 = vrot.lane.b32.xlu1 %v1644_v6, %s1540_s15  ;;  %vm432_vm0 = vcmask 1044352  }
  0x6a   :  { %370 = vrot.lane.b32.xlu0 %v1639_v4, %s1540_s15 }
  0x6d   :  { %396 = vrot.lane.b32.xlu1 %v1644_v6, %s1541_s16 }
  0x6e   :  { %394 = vrot.lane.b32.xlu0 %v1639_v4, %s1541_s16 }
  0x71   :  { %420 = vrot.lane.b32.xlu1 %v1644_v6, %s1542_s17 }
  0x72   :  { %418 = vrot.lane.b32.xlu0 %v1639_v4, %s1542_s17  ;;  %s1544_s17 = smov 12  }
  0xcb   :  { %v1675_v27 = vpop.permute.xlu1 %298 }
  0xcc   :  { %v1677_v28 = vpop.permute.xlu0 %274 }
  0xcf   :  { %v1684_v32 = vpop.permute.xlu1 %300 }
  0xd0   :  { %v1686_v33 = vpop.permute.xlu0 %276 }
  0xd3   :  { %v1691_v35 = vpop.permute.xlu1 %324 }
  0xd4   :  { %v1693_v36 = vpop.permute.xlu0 %322 }
  0xd7   :  { %v1705_v43 = vpop.permute.xlu1 %348 }
  0xd8   :  { %v1707_v44 = vpop.permute.xlu0 %346 }
  0xdb   :  { %v1721_v53 = vpop.permute.xlu1 %372 }
  0xdc   :  { %v1723_v54 = vpop.permute.xlu0 %370 }
  0xdf   :  { %v1731_v60 = vpop.permute.xlu1 %396 }
  0xe0   :  { %v395_v61 = vpop.permute.xlu0 %394 }
  0xe3   :  { %v1745_v10 = vpop.permute.xlu1 %420 }
  0xe4   :  { %v419_v11 = vpop.permute.xlu0 %418 }
 0x128   :  { %v210_v13 = vpop.f32.mrf.mxu0 }
 0x129   :  { %v211_v14 = vadd.f32 %v1203_v12, %v210_v13 }
 0x12a   :  { %v1263_v15 = vpop.f32.mrf.mxu0 }
 0x12b   :  { %v214_v16 = vsub.f32 0.0, %v211_v14 }
 0x12d   :  { %v215_v17 = vmul.f32 1.442695, %v214_v16 }
 0x12f   :  { %1343 = vpow2.f32 %v215_v17 }
 0x13c   :  { %v1344_v18 = vpop.eup %1343 }
 0x13d   :  { %v217_v19 = vadd.f32 1.0, %v1344_v18 }
 0x13f   :  { %1345 = vrcp.f32 %v217_v19 }
 0x14c   :  { %v1346_v26 = vpop.eup %1345 }
 0x14d   :  { %v228_v29 = vrot.slane %v1346_v26, %v1673_v25 }
 0x14f   :  { %v236_v30 = vrot.slane %v228_v29, %v1673_v25  ;;  %v229_v59 = vcombine.high %v228_v29, %v228_v29 }
 0x151   :  { %v1689_v34 = vrot.slane %v236_v30, %v1682_v31  ;;  %v243_v3 = vrot.slane %v229_v59, %v1673_v25  ;;  %v679_v59 = vld [vmem:[%s2125_s4 + $0x28] sm:$0xff] }
 0x153   :  { %v255_v37 = vadd.f32 %v1689_v34, %v1644_v6  ;;  %v254_v38 = vadd.f32 %v1689_v34, %v1639_v4  ;;  %v280_v39 = vadd.f32 %v1677_v28, %v1689_v34  ;;  %v281_v40 = vadd.f32 %v1686_v33, %v1689_v34 }
 0x154   :  { %v304_v45 = vadd.f32 %v1675_v27, %v1689_v34  ;;  %v305_v46 = vadd.f32 %v1684_v32, %v1689_v34  ;;  %v329_v49 = vadd.f32 %v1691_v35, %v1689_v34  ;;  %v328_v50 = vadd.f32 %v1693_v36, %v1689_v34 }
 0x155   :  { %v263_v41 = vsel %vm262_vm2, %v255_v37, -inf  ;;  %v259_v42 = vsel %vm258_vm3, %v254_v38, -inf  ;;  %v285_v47 = vsel %vm284_vm4, %v280_v39, -inf  ;;  %v289_v48 = vsel %vm288_vm5, %v281_v40, -inf }
 0x156   :  { %264 = vmax.xlane.f32.xlu1 %v263_v41  ;;  %260 = vmax.xlane.f32.xlu0 %v259_v42  ;;  %v309_v51 = vsel %vm308_vm6, %v304_v45, -inf  ;;  %v313_v52 = vsel %vm312_vm7, %v305_v46, -inf  ;;  %v353_v55 = vadd.f32 %v1705_v43, %v1689_v34  ;;  %v352_v56 = vadd.f32 %v1707_v44, %v1689_v34 }
 0x157   :  { %v333_v57 = vsel %vm332_vm8, %v328_v50, -inf  ;;  %v337_v58 = vsel %vm336_vm9, %v329_v49, -inf  ;;  %v377_v62 = vadd.f32 %v1721_v53, %v1689_v34  ;;  %v376_v63 = vadd.f32 %v1723_v54, %v1689_v34  ;;  %v685_v50 = vld [vmem:[%s2125_s4 + $0x58] sm:$0xff] }
 0x158   :  { %v357_v1 = vsel %vm356_vm10, %v352_v56, -inf  ;;  %v361_v2 = vsel %vm360_vm11, %v353_v55, -inf  ;;  %v401_v5 = vadd.f32 %v1731_v60, %v1689_v34  ;;  %v400_v7 = vadd.f32 %v395_v61, %v1689_v34  ;;  %1265 = vmatpush3.msra.mxu1 %v685_v50  ;;  %v682_v56 = vld [vmem:[%s2125_s4 + $0x40] sm:$0xff] }
 0x159   :  { %v381_v8 = vsel %vm380_vm12, %v376_v63, -inf  ;;  %v385_v9 = vsel %vm384_vm13, %v377_v62, -inf  ;;  %v251_v12 = vrot.slane %v243_v3, %v1682_v31  ;;  %v425_v13 = vadd.f32 %v1745_v10, %v1689_v34  ;;  %1266 = vmatprep.subr.mxu1 %v1534_v0  ;;  %v676_v62 = vld [vmem:[%s2125_s4 + $0x10] sm:$0xff]  ;;  %v675_v63 = vld [vmem:[%s2125_s4 + $0x8] sm:$0xff] }
 0x15a   :  { %286 = vmax.xlane.f32.xlu1 %v285_v47  ;;  %290 = vmax.xlane.f32.xlu0 %v289_v48  ;;  %v424_v14 = vadd.f32 %v419_v11, %v1689_v34  ;;  %v405_v15 = vsel %vm404_vm14, %v400_v7, -inf  ;;  %v409_v16 = vsel %vm408_vm15, %v401_v5, -inf }
 0x15b   :  { %v282_v17 = vadd.f32 %v1677_v28, %v251_v12  ;;  %v433_v19 = vsel %vm432_vm0, %v425_v13, -inf  ;;  %v256_v20 = vadd.f32 %v251_v12, %v1639_v4  ;;  %v306_v21 = vadd.f32 %v1675_v27, %v251_v12 }
 0x15c   :  { %v429_v18 = vsel %vm428_vm1, %v424_v14, -inf  ;;  %v257_v29 = vadd.f32 %v251_v12, %v1644_v6  ;;  %v283_v28 = vadd.f32 %v1686_v33, %v251_v12  ;;  %v330_v30 = vadd.f32 %v1693_v36, %v251_v12 }
 0x15d   :  { %v292_v23 = vsel %vm284_vm4, %v282_v17, -inf  ;;  %v266_v26 = vsel %vm258_vm3, %v256_v20, -inf  ;;  %v316_v34 = vsel %vm308_vm6, %v306_v21, -inf  ;;  %v307_v27 = vadd.f32 %v1684_v32, %v251_v12 }
 0x15e   :  { %310 = vmax.xlane.f32.xlu1 %v309_v51  ;;  %314 = vmax.xlane.f32.xlu0 %v313_v52  ;;  %v269_v4 = vsel %vm262_vm2, %v257_v29, -inf  ;;  %v354_v37 = vadd.f32 %v1707_v44, %v251_v12  ;;  %v340_v38 = vsel %vm332_vm8, %v330_v30, -inf  ;;  %v295_v6 = vsel %vm288_vm5, %v283_v28, -inf }
 0x15f   :  { %v331_v33 = vadd.f32 %v1691_v35, %v251_v12  ;;  %v378_v36 = vadd.f32 %v1723_v54, %v251_v12  ;;  %v319_v40 = vsel %vm312_vm7, %v307_v27, -inf  ;;  %v355_v32 = vadd.f32 %v1705_v43, %v251_v12  ;;  %v683_v54 = vld [vmem:[%s2125_s4 + $0x48] sm:$0xff] }
 0x160   :  { %v364_v39 = vsel %vm356_vm10, %v354_v37, -inf  ;;  %v402_v41 = vadd.f32 %v395_v61, %v251_v12  ;;  %v379_v45 = vadd.f32 %v1721_v53, %v251_v12  ;;  %v426_v35 = vadd.f32 %v419_v11, %v251_v12  ;;  %v684_v53 = vld [vmem:[%s2125_s4 + $0x50] sm:$0xff]  ;;  %v677_v61 = vld [vmem:[%s2125_s4 + $0x18] sm:$0xff] }
 0x161   :  { %v388_v42 = vsel %vm380_vm12, %v378_v36, -inf  ;;  %v343_v44 = vsel %vm336_vm9, %v331_v33, -inf  ;;  %v367_v47 = vsel %vm360_vm11, %v355_v32, -inf  ;;  %v403_v48 = vadd.f32 %v1731_v60, %v251_v12  ;;  %1267 = vmatpush3.msra.mxu1 %v684_v53  ;;  %v678_v60 = vld [vmem:[%s2125_s4 + $0x20] sm:$0xff] }
 0x162   :  { %334 = vmax.xlane.f32.xlu1 %v333_v57  ;;  %338 = vmax.xlane.f32.xlu0 %v337_v58  ;;  %v412_v46 = vsel %vm404_vm14, %v402_v41, -inf  ;;  %v436_v43 = vsel %vm428_vm1, %v426_v35, -inf  ;;  %v391_v49 = vsel %vm384_vm13, %v379_v45, -inf  ;;  %v427_v51 = vadd.f32 %v1745_v10, %v251_v12  ;;  %v681_v57 = vld [vmem:[%s2125_s4 + $0x38] sm:$0xff]  ;;  %v680_v58 = vld [vmem:[%s2125_s4 + $0x30] sm:$0xff] }
 0x163   :  { %v415_v52 = vsel %vm408_vm15, %v403_v48, -inf  ;;  %1268 = vmatprep.subr.mxu1 %v1534_v0  ;;  %vm485_vm1 = vcmask 228512   ;;  %vm512_vm2 = vcmask 326912   ;;  %vm539_vm4 = vcmask 425312  }
 0x164   :  { %v439_v55 = vsel %vm432_vm0, %v427_v51, -inf  ;;  %1269 = vmatpush3.msra.mxu1 %v683_v54  ;;  %vm457_vm0 = vcmask 130112   ;;  %vm566_vm5 = vcmask 523712   ;;  %vm593_vm6 = vcmask 622112  }
 0x165   :  { %1270 = vmatprep.subr.mxu1 %v1534_v0  ;;  %vm620_vm7 = vcmask 720512   ;;  %vm468_vm8 = vcmask 1041409   ;;  %vm660_vm9 = vcmask 97280   ;;  %vm662_vm10 = vcmask 195584  }
 0x166   :  { %358 = vmax.xlane.f32.xlu1 %v357_v1  ;;  %362 = vmax.xlane.f32.xlu0 %v361_v2  ;;  %v1827_v1 = vld [vmem:[#allocation11] sm:$0xff]  ;;  %v674_v2 = vld [vmem:[%s2125_s4] sm:$0xff]  ;;  %s1548_s4 = smov 72   ;;  %vm664_vm11 = vcmask 293888   ;;  %vm666_vm12 = vcmask 392192   ;;  %vm647_vm13 = vcmask 818912  }
 0x167   :  { %1271 = vmatpush3.msra.mxu1 %v682_v56  ;;  %vm668_vm14 = vcmask 490496   ;;  %vm670_vm15 = vcmask 588800  }
 0x168   :  { %1272 = vmatprep.subr.mxu1 %v1534_v0 }
 0x169   :  { %1273 = vmatpush3.msra.mxu1 %v681_v57 }
 0x16a   :  { %382 = vmax.xlane.f32.xlu1 %v381_v8  ;;  %386 = vmax.xlane.f32.xlu0 %v385_v9 }
 0x16b   :  { %1274 = vmatprep.subr.mxu1 %v1534_v0 }
 0x16c   :  { %1275 = vmatpush3.msra.mxu1 %v680_v58 }
 0x16d   :  { %1276 = vmatprep.subr.mxu1 %v1534_v0 }
 0x16e   :  { %406 = vmax.xlane.f32.xlu1 %v405_v15  ;;  %410 = vmax.xlane.f32.xlu0 %v409_v16 }
 0x16f   :  { %1277 = vmatpush3.msra.mxu1 %v679_v59 }
 0x170   :  { %1278 = vmatprep.subr.mxu1 %v1534_v0 }
 0x171   :  { %1279 = vmatpush3.msra.mxu1 %v678_v60 }
 0x172   :  { %430 = vmax.xlane.f32.xlu1 %v429_v18  ;;  %434 = vmax.xlane.f32.xlu0 %v433_v19 }
 0x173   :  { %1280 = vmatprep.subr.mxu1 %v1534_v0 }
 0x174   :  { %1281 = vmatpush3.msra.mxu1 %v677_v61 }
 0x175   :  { %1282 = vmatprep.subr.mxu1 %v1534_v0 }
 0x176   :  { %293 = vmax.xlane.f32.xlu1 %v292_v23  ;;  %267 = vmax.xlane.f32.xlu0 %v266_v26  ;;  %v1880_v26 = vand.u32 127, %v225_v22 }
 0x177   :  { %1283 = vmatpush3.msra.mxu1 %v676_v62 }
 0x178   :  { %1284 = vmatprep.subr.mxu1 %v1534_v0  ;;  %v452_v30 = vadd.s32 4294967288, %v1880_v26  ;;  %v480_v37 = vadd.s32 4294967276, %v1880_v26  ;;  %v1900_v33 = vsub.s32 %v1880_v26, %v1670_v24  ;;  %v556_v32 = vadd.s32 4294967248, %v1880_v26 }
 0x179   :  { %1285 = vmatpush3.msra.mxu1 %v675_v63  ;;  %v583_v45 = vadd.s32 4294967236, %v1880_v26  ;;  %v588_v35 = vadd.s32 4294967228, %v1880_v26  ;;  %v637_v50 = vadd.s32 4294967212, %v1880_v26  ;;  %v642_v51 = vadd.s32 4294967204, %v1880_v26 }
 0x17a   :  { %317 = vmax.xlane.f32.xlu1 %v316_v34  ;;  %270 = vmax.xlane.f32.xlu0 %v269_v4  ;;  %v475_v34 = vadd.s32 4294967284, %v1880_v26  ;;  %v1896_v22 = vsub.s32 %v452_v30, %v1670_v24  ;;  %v1929_v54 = vsub.s32 %v556_v32, %v1670_v24 }
 0x17b   :  { %1286 = vmatprep.subr.mxu1 %v1534_v0  ;;  %v1935_v57 = vsub.s32 %v583_v45, %v1670_v24  ;;  %v591_v58 = vsub.s32 %v588_v35, %v1670_v24 }
 0x17c   :  { %1287 = vmatpush3.msra.mxu1 %v674_v2  ;;  %v1903_v36 = vsub.s32 %v475_v34, %v1670_v24  ;;  %v1952_v34 = vsub.s32 %v637_v50, %v1670_v24 }
 0x17d   :  { %1310 = vmatprep.subr.mxu1 %v1534_v0 }
 0x17e   :  { %341 = vmax.xlane.f32.xlu1 %v340_v38  ;;  %296 = vmax.xlane.f32.xlu0 %v295_v6  ;;  %v502_v38 = vadd.s32 4294967272, %v1880_v26  ;;  %v507_v6 = vadd.s32 4294967264, %v1880_v26 }
 0x180   :  { %v1920_v48 = vsub.s32 %v507_v6, %v1670_v24 }
 0x182   :  { %365 = vmax.xlane.f32.xlu1 %v364_v39  ;;  %320 = vmax.xlane.f32.xlu0 %v319_v40  ;;  %v529_v39 = vadd.s32 4294967260, %v1880_v26  ;;  %v534_v40 = vadd.s32 4294967252, %v1880_v26 }
 0x184   :  { %v537_v53 = vsub.s32 %v534_v40, %v1670_v24 }
 0x186   :  { %389 = vmax.xlane.f32.xlu1 %v388_v42  ;;  %344 = vmax.xlane.f32.xlu0 %v343_v44  ;;  %v561_v44 = vadd.s32 4294967240, %v1880_v26 }
 0x188   :  { %v1932_v56 = vsub.s32 %v561_v44, %v1670_v24 }
 0x18a   :  { %413 = vmax.xlane.f32.xlu1 %v412_v46  ;;  %368 = vmax.xlane.f32.xlu0 %v367_v47  ;;  %v483_v46 = vsub.s32 %v480_v37, %v1670_v24  ;;  %v1917_v47 = vsub.s32 %v502_v38, %v1670_v24 }
 0x18e   :  { %437 = vmax.xlane.f32.xlu1 %v436_v43  ;;  %392 = vmax.xlane.f32.xlu0 %v391_v49  ;;  %v610_v43 = vadd.s32 4294967224, %v1880_v26  ;;  %v615_v49 = vadd.s32 4294967216, %v1880_v26 }
 0x190   :  { %v1946_v2 = vsub.s32 %v610_v43, %v1670_v24  ;;  %v1949_v30 = vsub.s32 %v615_v49, %v1670_v24 }
 0x192   :  { %416 = vmax.xlane.f32.xlu0 %v415_v52  ;;  %v532_v52 = vsub.s32 %v529_v39, %v1670_v24 }
 0x196   :  { %440 = vmax.xlane.f32.xlu0 %v439_v55 }
 0x19f   :  { %815 = vrot.lane.b32.xlu1 %v1827_v1, %s1544_s17 }
 0x1a3   :  { %839 = vrot.lane.b32.xlu1 %v1827_v1, %s1545_s18 }
 0x1a7   :  { %851 = vrot.lane.b32.xlu1 %v1827_v1, %s1538_s13 }
 0x1ab   :  { %875 = vrot.lane.b32.xlu1 %v1827_v1, %s1548_s4 }
 0x1ac   :  { %827 = vrot.lane.b32.xlu0 %v1827_v1, %s1546_s3 }
 0x1b0   :  { %863 = vrot.lane.b32.xlu0 %v1827_v1, %s1547_s19 }
 0x1b4   :  { %887 = vrot.lane.b32.xlu0 %v1827_v1, %s1549_s20 }
 0x1df   :  { %v1843_v3 = vpop.xlane.xlu1 %264  ;;  %v1845_v5 = vpop.xlane.xlu0 %260 }
 0x1e0   :  { %v456_v59 = vrot.slane %v1843_v3, %v1896_v22  ;;  %v451_v60 = vrot.slane %v1845_v5, %v1900_v33  ;;  %v1955_v3 = vsub.s32 %v642_v51, %v1670_v24 }
 0x1e2   :  { %v458_v39 = vsel %vm457_vm0, %v456_v59, %v451_v60 }
 0x1e3   :  { %v1847_v7 = vpop.xlane.xlu1 %286  ;;  %v1849_v8 = vpop.xlane.xlu0 %290 }
 0x1e4   :  { %v479_v61 = vrot.slane %v1847_v7, %v1903_v36  ;;  %v484_v62 = vrot.slane %v1849_v8, %v483_v46 }
 0x1e6   :  { %v486_v40 = vsel %vm485_vm1, %v484_v62, %v479_v61 }
 0x1e7   :  { %v1851_v9 = vpop.xlane.xlu1 %310  ;;  %v1853_v10 = vpop.xlane.xlu0 %314 }
 0x1e8   :  { %v506_v5 = vrot.slane %v1851_v9, %v1917_v47  ;;  %v511_v7 = vrot.slane %v1853_v10, %v1920_v48 }
 0x1ea   :  { %v513_v44 = vsel %vm512_vm2, %v511_v7, %v506_v5 }
 0x1eb   :  { %v1855_v11 = vpop.xlane.xlu1 %334  ;;  %v1857_v12 = vpop.xlane.xlu0 %338 }
 0x1ec   :  { %v533_v8 = vrot.slane %v1855_v11, %v532_v52  ;;  %v538_v37 = vrot.slane %v1857_v12, %v537_v53 }
 0x1ee   :  { %v540_v45 = vsel %vm539_vm4, %v538_v37, %v533_v8 }
 0x1ef   :  { %v1859_v13 = vpop.xlane.xlu1 %358  ;;  %v1861_v14 = vpop.xlane.xlu0 %362 }
 0x1f0   :  { %v560_v9 = vrot.slane %v1859_v13, %v1929_v54  ;;  %v565_v11 = vrot.slane %v1861_v14, %v1932_v56 }
 0x1f2   :  { %v567_v51 = vsel %vm566_vm5, %v565_v11, %v560_v9 }
 0x1f3   :  { %v1863_v15 = vpop.xlane.xlu1 %382  ;;  %v1865_v16 = vpop.xlane.xlu0 %386 }
 0x1f4   :  { %v587_v43 = vrot.slane %v1863_v15, %v1935_v57  ;;  %v592_v49 = vrot.slane %v1865_v16, %v591_v58 }
 0x1f6   :  { %v594_v61 = vsel %vm593_vm6, %v592_v49, %v587_v43 }
 0x1f7   :  { %v1867_v17 = vpop.xlane.xlu1 %406  ;;  %v1869_v18 = vpop.xlane.xlu0 %410 }
 0x1f8   :  { %v619_v15 = vrot.slane %v1869_v18, %v1949_v30 }
 0x1fb   :  { %v1871_v19 = vpop.xlane.xlu1 %430  ;;  %v1873_v20 = vpop.xlane.xlu0 %434 }
 0x1fc   :  { %v646_v5 = vrot.slane %v1873_v20, %v1955_v3 }
 0x1ff   :  { %v1875_v21 = vpop.xlane.xlu1 %293  ;;  %v1877_v23 = vpop.xlane.xlu0 %267 }
 0x200   :  { %v490_v12 = vrot.slane %v1875_v21, %v1903_v36  ;;  %v462_v21 = vrot.slane %v1877_v23, %v1900_v33 }
 0x203   :  { %v1882_v29 = vpop.xlane.xlu1 %317  ;;  %v1884_v28 = vpop.xlane.xlu0 %270 }
 0x204   :  { %v517_v13 = vrot.slane %v1882_v29, %v1917_v47 }
 0x207   :  { %v1888_v4 = vpop.xlane.xlu1 %341  ;;  %v1890_v27 = vpop.xlane.xlu0 %296 }
 0x208   :  { %v494_v6 = vrot.slane %v1890_v27, %v483_v46  ;;  %v466_v27 = vrot.slane %v1884_v28, %v1896_v22  ;;  %v544_v28 = vrot.slane %v1888_v4, %v532_v52  ;;  %v614_v52 = vrot.slane %v1867_v17, %v1946_v2 }
 0x209   :  { %v641_v17 = vrot.slane %v1871_v19, %v1952_v34 }
 0x20a   :  { %v495_v36 = vsel %vm485_vm1, %v494_v6, %v490_v12  ;;  %vm693_vm1 = vcmask 785408  }
 0x20b   :  { %v1908_v41 = vpop.xlane.xlu1 %365  ;;  %v1910_v42 = vpop.xlane.xlu0 %320  ;;  %v496_v16 = vsel %vm468_vm8, %v495_v36, %v486_v40 }
 0x20c   :  { %v521_v10 = vrot.slane %v1910_v42, %v1920_v48  ;;  %v571_v29 = vrot.slane %v1908_v41, %v1929_v54 }
 0x20e   :  { %v522_v50 = vsel %vm512_vm2, %v521_v10, %v517_v13  ;;  %v648_v10 = vsel %vm647_vm13, %v646_v5, %v641_v17  ;;  %vm2135_vm2 = vmmov 0  }
 0x20f   :  { %v345_v55 = vpop.xlane.xlu0 %344  ;;  %v390_v63 = vpop.xlane.xlu1 %389 }
 0x210   :  { %v548_v32 = vrot.slane %v345_v55, %v537_v53  ;;  %v467_v53 = vsel %vm457_vm0, %v466_v27, %v462_v21  ;;  %v598_v23 = vrot.slane %v390_v63, %v1935_v57  ;;  %vm672_vm0 = vcmask 687104  }
 0x211   :  { %v469_v18 = vsel %vm468_vm8, %v467_v53, %v458_v39 }
 0x212   :  { %v549_v4 = vsel %vm539_vm4, %v548_v32, %v544_v28  ;;  %v661_v7 = vsel %vm660_vm9, %v469_v18, %v496_v16  ;;  %vm820_vm4 = vcmask 195680  }
 0x213   :  { %v369_v38 = vpop.xlane.xlu0 %368  ;;  %v414_v42 = vpop.xlane.xlu1 %413  ;;  %v550_v62 = vsel %vm468_vm8, %v549_v4, %v540_v45 }
 0x214   :  { %v575_v35 = vrot.slane %v369_v38, %v1932_v56  ;;  %v625_v59 = vrot.slane %v414_v42, %v1946_v2 }
 0x216   :  { %v576_v41 = vsel %vm566_vm5, %v575_v35, %v571_v29  ;;  %vm832_vm5 = vcmask 294080  }
 0x217   :  { %v393_v14 = vpop.xlane.xlu0 %392  ;;  %v438_v63 = vpop.xlane.xlu1 %437  ;;  %v577_v2 = vsel %vm468_vm8, %v576_v41, %v567_v51 }
 0x218   :  { %v602_v46 = vrot.slane %v393_v14, %v591_v58  ;;  %v523_v58 = vsel %vm468_vm8, %v522_v50, %v513_v44  ;;  %v652_v39 = vrot.slane %v438_v63, %v1952_v34  ;;  %v1205_v34 = vld [vmem:[#allocation10] ss:$0 sm:$0xff] }
 0x219   :  { %v663_v37 = vsel %vm662_vm10, %v661_v7, %v523_v58 }
 0x21a   :  { %v603_v60 = vsel %vm593_vm6, %v602_v46, %v598_v23  ;;  %v665_v6 = vsel %vm664_vm11, %v663_v37, %v550_v62  ;;  %vm844_vm6 = vcmask 392480   ;;  %vm868_vm11 = vcmask 589280  }
 0x21b   :  { %v417_v55 = vpop.xlane.xlu0 %416  ;;  %v604_v19 = vsel %vm468_vm8, %v603_v60, %v594_v61  ;;  %v667_v9 = vsel %vm666_vm12, %v665_v6, %v577_v2  ;;  %v816_v50 = vpop.permute.xlu1 %815 }
 0x21c   :  { %v629_v57 = vrot.slane %v417_v55, %v1949_v30  ;;  %v621_v30 = vsel %vm620_vm7, %v619_v15, %v614_v52  ;;  %v669_v12 = vsel %vm668_vm14, %v667_v9, %v604_v19  ;;  %vm892_vm14 = vcmask 786080  }
 0x21e   :  { %v630_v8 = vsel %vm620_vm7, %v629_v57, %v625_v59  ;;  %vm856_vm7 = vcmask 490880  }
 0x21f   :  { %v441_v38 = vpop.xlane.xlu0 %440  ;;  %v631_v20 = vsel %vm468_vm8, %v630_v8, %v621_v30  ;;  %v840_v15 = vpop.permute.xlu1 %839 }
 0x220   :  { %v656_v40 = vrot.slane %v441_v38, %v1955_v3  ;;  %v671_v32 = vsel %vm670_vm15, %v669_v12, %v631_v20  ;;  %vm1001_vm15 = vcmask 261120  }
 0x222   :  { %v657_v11 = vsel %vm647_vm13, %v656_v40, %v652_v39  ;;  %vm880_vm13 = vcmask 687680  }
 0x223   :  { %v658_v27 = vsel %vm468_vm8, %v657_v11, %v648_v10  ;;  %v828_v23 = vpop.permute.xlu0 %827 }
 0x224   :  { %v673_v44 = vsel %vm672_vm0, %v671_v32, %v658_v27  ;;  %vm1003_vm0 = vcmask 326656  }
 0x225   :  { %1289 = vmatmul.mubr.msk.f32.vlgmr.msra.gmra.mxu1 %vm693_vm1, %v673_v44  ;;  %v1015_v44 = vld [vmem:[%s2128_s7 + $0x38] sm:$0xff]  ;;  %vm2136_vm1 = vcmask 523264  }
 0x226   :  { %1314 = vmatprep.mubr.msk.f32.mxu1 %vm2135_vm2, %v1534_v0  ;;  %1292 = vmatpush3.msra.mxu0 %v1015_v44 }
 0x227   :  { %v864_v18 = vpop.permute.xlu0 %863  ;;  %1293 = vmatprep.subr.mxu0 %v1534_v0 }
 0x22b   :  { %v888_v20 = vpop.permute.xlu0 %887 }
 0x2e5   :  { %v763_v3 = vpop.f32.mrf.mxu1 }
 0x2e6   :  { %v764_v45 = vadd.f32 %v1205_v34, %v763_v3  ;;  %v1014_v34 = vld [vmem:[%s2128_s7 + $0x30] sm:$0xff]  ;;  %v1013_v3 = vld [vmem:[%s2128_s7 + $0x28] sm:$0xff] }
 0x2e7   :  { %v1290_v13 = vpop.f32.mrf.mxu1  ;;  %1294 = vmatpush3.msra.mxu0 %v1014_v34 }
 0x2e8   :  { %v767_v42 = vsub.f32 0.0, %v764_v45  ;;  %1295 = vmatprep.subr.mxu0 %v1534_v0  ;;  %v1012_v45 = vld [vmem:[%s2128_s7 + $0x20] sm:$0xff]  ;;  %v1011_v13 = vld [vmem:[%s2128_s7 + $0x18] sm:$0xff] }
 0x2e9   :  { %1296 = vmatpush3.msra.mxu0 %v1013_v3 }
 0x2ea   :  { %v768_v35 = vmul.f32 1.442695, %v767_v42  ;;  %1297 = vmatprep.subr.mxu0 %v1534_v0  ;;  %v1010_v42 = vld [vmem:[%s2128_s7 + $0x10] sm:$0xff] }
 0x2eb   :  { %1298 = vmatpush3.msra.mxu0 %v1012_v45 }
 0x2ec   :  { %1347 = vpow2.f32 %v768_v35  ;;  %1299 = vmatprep.subr.mxu0 %v1534_v0  ;;  %v1009_v35 = vld [vmem:[%s2128_s7 + $0x8] sm:$0xff] }
 0x2ed   :  { %1300 = vmatpush3.msra.mxu0 %v1011_v13 }
 0x2ee   :  { %1301 = vmatprep.subr.mxu0 %v1534_v0 }
 0x2ef   :  { %1302 = vmatpush3.msra.mxu0 %v1010_v42 }
 0x2f0   :  { %1303 = vmatprep.subr.mxu0 %v1534_v0 }
 0x2f1   :  { %1304 = vmatpush3.msra.mxu0 %v1009_v35 }
 0x2f2   :  { %1305 = vmatprep.subr.mxu0 %v1534_v0 }
 0x2f9   :  { %v1348_v14 = vpop.eup %1347 }
 0x2fa   :  { %v770_v21 = vadd.f32 1.0, %v1348_v14  ;;  %v1008_v14 = vld [vmem:[%s2128_s7] sm:$0xff] }
 0x2fb   :  { %1306 = vmatpush3.msra.mxu0 %v1008_v14  ;;  %v1209_v14 = vld [vmem:[%s2131_s10] ss:$0 sm:$0xff] }
 0x2fc   :  { %1349 = vrcp.f32 %v770_v21 }
 0x309   :  { %v1350_v28 = vpop.eup %1349 }
 0x30a   :  { %v780_v36 = vrot.slane %v1350_v28, %v1673_v25 }
 0x30c   :  { %v781_v46 = vcombine.high %v780_v36, %v780_v36  ;;  %v788_v43 = vrot.slane %v780_v36, %v1673_v25 }
 0x30e   :  { %v795_v49 = vrot.slane %v781_v46, %v1673_v25  ;;  %v799_v29 = vrot.slane %v788_v43, %v1682_v31 }
 0x310   :  { %v818_v51 = vadd.f32 %v816_v50, %v799_v29  ;;  %v803_v53 = vrot.slane %v795_v49, %v1682_v31  ;;  %v830_v4 = vadd.f32 %v828_v23, %v799_v29  ;;  %v806_v16 = vadd.f32 %v799_v29, %v1827_v1  ;;  %v852_v31 = vpop.permute.xlu1 %851 }
 0x311   :  { %v842_v25 = vadd.f32 %v840_v15, %v799_v29  ;;  %v854_v57 = vadd.f32 %v852_v31, %v799_v29  ;;  %v866_v63 = vadd.f32 %v864_v18, %v799_v29  ;;  %v890_v10 = vadd.f32 %v888_v20, %v799_v29 }
 0x312   :  { %v821_v52 = vsel %vm820_vm4, %v818_v51, -inf  ;;  %v819_v41 = vadd.f32 %v816_v50, %v803_v53  ;;  %v808_v55 = vsel %vm660_vm9, %v806_v16, -inf  ;;  %v833_v58 = vsel %vm832_vm5, %v830_v4, -inf }
 0x313   :  { %822 = vmax.xlane.f32.xlu0 %v821_v52  ;;  %809 = vmax.xlane.f32.xlu1 %v808_v55  ;;  %v831_v59 = vadd.f32 %v828_v23, %v803_v53  ;;  %v845_v61 = vsel %vm844_vm6, %v842_v25, -inf  ;;  %v843_v17 = vadd.f32 %v840_v15, %v803_v53  ;;  %v857_v5 = vsel %vm856_vm7, %v854_v57, -inf }
 0x314   :  { %v824_v60 = vsel %vm820_vm4, %v819_v41, -inf  ;;  %v855_v7 = vadd.f32 %v852_v31, %v803_v53  ;;  %v869_v8 = vsel %vm868_vm11, %v866_v63, -inf  ;;  %v807_v30 = vadd.f32 %v803_v53, %v1827_v1  ;;  %v876_v37 = vpop.permute.xlu1 %875 }
 0x315   :  { %v836_v62 = vsel %vm832_vm5, %v831_v59, -inf  ;;  %v848_v2 = vsel %vm844_vm6, %v843_v17, -inf  ;;  %v867_v19 = vadd.f32 %v864_v18, %v803_v53  ;;  %v878_v6 = vadd.f32 %v876_v37, %v799_v29 }
 0x316   :  { %v860_v38 = vsel %vm856_vm7, %v855_v7, -inf  ;;  %v811_v39 = vsel %vm660_vm9, %v807_v30, -inf  ;;  %v879_v40 = vadd.f32 %v876_v37, %v803_v53  ;;  %v891_v1 = vadd.f32 %v888_v20, %v803_v53 }
 0x317   :  { %834 = vmax.xlane.f32.xlu0 %v833_v58  ;;  %825 = vmax.xlane.f32.xlu1 %v824_v60  ;;  %v872_v9 = vsel %vm868_vm11, %v867_v19, -inf  ;;  %v881_v11 = vsel %vm880_vm13, %v878_v6, -inf  ;;  %v893_v27 = vsel %vm892_vm14, %v890_v10, -inf  ;;  %v925_v50 = vadd.s32 4294967280, %v1880_v26 }
 0x318   :  { %v884_v12 = vsel %vm880_vm13, %v879_v40, -inf  ;;  %v896_v32 = vsel %vm892_vm14, %v891_v1, -inf  ;;  %v962_v16 = vadd.s32 4294967256, %v1880_v26  ;;  %vm997_vm9 = vcmask 64512  }
 0x319   :  { %v928_v23 = vsub.s32 %v925_v50, %v1670_v24 }
 0x31b   :  { %846 = vmax.xlane.f32.xlu0 %v845_v61  ;;  %837 = vmax.xlane.f32.xlu1 %v836_v62  ;;  %v965_v62 = vsub.s32 %v962_v16, %v1670_v24 }
 0x31f   :  { %858 = vmax.xlane.f32.xlu0 %v857_v5  ;;  %849 = vmax.xlane.f32.xlu1 %v848_v2 }
 0x323   :  { %870 = vmax.xlane.f32.xlu0 %v869_v8  ;;  %861 = vmax.xlane.f32.xlu1 %v860_v38 }
 0x327   :  { %812 = vmax.xlane.f32.xlu0 %v811_v39  ;;  %873 = vmax.xlane.f32.xlu1 %v872_v9 }
 0x32b   :  { %882 = vmax.xlane.f32.xlu0 %v881_v11  ;;  %885 = vmax.xlane.f32.xlu1 %v884_v12 }
 0x32f   :  { %894 = vmax.xlane.f32.xlu0 %v893_v27  ;;  %897 = vmax.xlane.f32.xlu1 %v896_v32  ;;  %v1101_v27 = vld [vmem:[%s2130_s9] sm:$0xff] }
 0x39c   :  { %v823_v21 = vpop.xlane.xlu0 %822  ;;  %v810_v28 = vpop.xlane.xlu1 %809 }
 0x39d   :  { %v904_v55 = vrot.slane %v810_v28, %v1900_v33  ;;  %v916_v25 = vrot.slane %v823_v21, %v1896_v22 }
 0x3a0   :  { %v835_v36 = vpop.xlane.xlu0 %834  ;;  %v826_v46 = vpop.xlane.xlu1 %825 }
 0x3a1   :  { %v920_v4 = vrot.slane %v826_v46, %v1896_v22  ;;  %v929_v31 = vrot.slane %v835_v36, %v928_v23 }
 0x3a3   :  { %v921_v60 = vsel %vm468_vm8, %v920_v4, %v916_v25 }
 0x3a4   :  { %v847_v43 = vpop.xlane.xlu0 %846  ;;  %v838_v49 = vpop.xlane.xlu1 %837 }
 0x3a5   :  { %v933_v15 = vrot.slane %v838_v49, %v928_v23  ;;  %v941_v57 = vrot.slane %v847_v43, %v1917_v47 }
 0x3a7   :  { %v934_v18 = vsel %vm468_vm8, %v933_v15, %v929_v31 }
 0x3a8   :  { %v859_v29 = vpop.xlane.xlu0 %858  ;;  %v850_v51 = vpop.xlane.xlu1 %849 }
 0x3a9   :  { %v945_v58 = vrot.slane %v850_v51, %v1917_v47 }
 0x3ab   :  { %v946_v5 = vsel %vm468_vm8, %v945_v58, %v941_v57 }
 0x3ac   :  { %v871_v53 = vpop.xlane.xlu0 %870  ;;  %v862_v52 = vpop.xlane.xlu1 %861 }
 0x3ad   :  { %v957_v61 = vrot.slane %v862_v52, %v1920_v48  ;;  %v966_v19 = vrot.slane %v871_v53, %v965_v62 }
 0x3b0   :  { %v813_v41 = vpop.xlane.xlu0 %812  ;;  %v874_v17 = vpop.xlane.xlu1 %873 }
 0x3b1   :  { %v908_v59 = vrot.slane %v813_v41, %v1900_v33  ;;  %v953_v33 = vrot.slane %v859_v29, %v1920_v48  ;;  %v970_v2 = vrot.slane %v874_v17, %v965_v62 }
 0x3b3   :  { %v909_v26 = vsel %vm468_vm8, %v908_v59, %v904_v55  ;;  %v958_v8 = vsel %vm468_vm8, %v957_v61, %v953_v33  ;;  %v971_v39 = vsel %vm468_vm8, %v970_v2, %v966_v19 }
 0x3b4   :  { %v998_v63 = vsel %vm997_vm9, %v909_v26, %v921_v60  ;;  %v883_v22 = vpop.xlane.xlu0 %882  ;;  %v886_v30 = vpop.xlane.xlu1 %885 }
 0x3b5   :  { %v999_v7 = vsel %vm258_vm3, %v998_v63, %v934_v18  ;;  %v978_v37 = vrot.slane %v883_v22, %v1929_v54  ;;  %v982_v24 = vrot.slane %v886_v30, %v1929_v54  ;;  %v1102_v54 = vld [vmem:[%s2130_s9 + $0x8] sm:$0xff]  ;;  %s1550_s9 = smov [#allocation14]  }
 0x3b6   :  { %v1000_v47 = vsel %vm662_vm10, %v999_v7, %v946_v5  ;;  %vm1006_vm10 = vcmask 457728   ;;  %1311 = vmatpush3.msra.mxu1 %v1102_v54  ;;  %s1191_s17 = sshll.u32 %s1550_s9, 4  ;;  %s1192_s17 = int_to_ptr.vmem [resolvable:$true] %s1191_s17 }
 0x3b7   :  { %v1002_v38 = vsel %vm1001_vm15, %v1000_v47, %v958_v8  ;;  %v983_v40 = vsel %vm468_vm8, %v982_v24, %v978_v37  ;;  %1312 = vmatprep.subr.mxu1 %v1534_v0  ;;  %s1495_s18 = scalar_lea.vmem %s1192_s17, 32  ;;  %p1500_p8 = scmp.lt.s32.totalorder %s1192_s17, %s1192_s17 }
 0x3b8   :  { %v895_v6 = vpop.xlane.xlu0 %894  ;;  %v1004_v20 = vsel %vm1003_vm0, %v1002_v38, %v971_v39  ;;  %v898_v9 = vpop.xlane.xlu1 %897  ;;  %1313 = vmatpush3.msra.mxu1 %v1101_v27  ;;  %p1496_p7 = scmp.ne.s32.totalorder %s1192_s17, %s1495_s18  ;;  %p1501_p9 = scmp.lt.s32.totalorder %s1495_s18, %s1495_s18 }
 0x3b9   :  { %v990_v48 = vrot.slane %v895_v6, %v1932_v56  ;;  %v994_v10 = vrot.slane %v898_v9, %v1932_v56  ;;  %v1005_v11 = vsel %vm666_vm12, %v1004_v20, %v983_v40  ;;  %v1207_v56 = vld [vmem:[#allocation13] ss:$0 sm:$0xff] }
 0x3ba   :  { %p1502_p10 = por %p1501_p9, %p1500_p8 }
 0x3bb   :  { %v995_v1 = vsel %vm468_vm8, %v994_v10, %v990_v48  ;;  %vm1183_vm8 = vcmask 25600  }
 0x3bc   :  { %v1007_v12 = vsel %vm1006_vm10, %v1005_v11, %v995_v1  ;;  %p1503_p11 = pnand %p1502_p10, %p1496_p7 }
 0x3bd   :  { %1308 = vmatmul.mubr.msk.f32.vlgmr.msra.gmra.mxu0 %vm2136_vm1, %v1007_v12 }
 0x47d   :  { %v1092_v32 = vpop.f32.mrf.mxu0 }
 0x47e   :  { %v1093_v44 = vadd.f32 %v1207_v56, %v1092_v32 }
 0x47f   :  { %v1309_v34 = vpop.f32.mrf.mxu0 }
 0x480   :  { %v1096_v3 = vsub.f32 0.0, %v1093_v44 }
 0x482   :  { %v1097_v45 = vmul.f32 1.442695, %v1096_v3 }
 0x484   :  { %1351 = vpow2.f32 %v1097_v45 }
 0x491   :  { %v1352_v13 = vpop.eup %1351 }
 0x492   :  { %v1099_v42 = vadd.f32 1.0, %v1352_v13 }
 0x494   :  { %1353 = vrcp.f32 %v1099_v42 }
 0x4a1   :  { %v1354_v35 = vpop.eup %1353 }
 0x4a2   :  { %1315 = vmatmul.mubr.msk.f32.vlgmr.msra.gmra.mxu1 %vm258_vm3, %v1354_v35 }
 0x562   :  { %v1179_v0 = vpop.f32.mrf.mxu1 }
 0x563   :  { %v1180_v21 = vadd.f32 %v1209_v14, %v1179_v0 }
 0x564   :  { %v1316_v28 = vpop.f32.mrf.mxu1 }
 0x565   :  { %1184 = vst.msk [vmem:[#allocation14] sm:$0x3] %vm1183_vm8, %v1180_v21 }
 0x566   :  { %1506 = shalt.err (!%p1503_p11)
}
 0x567   :  { %1194 = dma.vmem_to_hbm [thread:$0]  %s1192_s17, 32, %s2132_s11, [#allocation4]  }
 0x568   :  { %1523 = dma.done.wait [#allocation4], 32  }
 0x569   :  { %1524 = vsyncadd [#allocation4], 4294967264 }
 0x56a   :  { %1198 = vsyncpa [#allocation3], 1 }
 0x56b   :  { %1199 = vsyncpa [#allocation6], 1 }
 0x56c   :  { %1200 = vsyncpa [#allocation9], 1 }
 0x56d   :  { %1201 = vsyncpa [#allocation12], 1 }
 0x56e   :  { %1202 = vsyncpa [#allocation4], 1 }

</bundles_post_ra>
